<compile_context>
chip_gen: v5e
topology: v5e:2x2
jax: 0.10.0
libtpu: 0.0.40
codegen_flags: <defaults>
</compile_context>

<pallas_src>
import functools

import jax
import jax.numpy as jnp
from jax.experimental import pallas as pl
from jax.experimental.pallas import tpu as pltpu


def _round_up(n, m):
    return ((n + m - 1) // m) * m


def _cdiv(a, b):
    return (a + b - 1) // b


def _choose_batch_tile(B, block_b):
    """Pick the batch tile (second-to-last block dim must be a multiple of 8
    or equal the full batch dim)."""
    block_b = max(8, _round_up(block_b, 8))
    if B > block_b:
        return block_b                      # many steps; multiple of 8
    if B >= 2048:
        # Whole batch fits in one tile: split into 2 so the parallel batch
        # axis can use both TensorCores on v7x (v5e/v6e: harmless).
        return _round_up(_cdiv(B, 2), 8)
    return B                                # single full-extent block


def mf_dqn_kernel(s_ref, m_ref, w1s_ref, w1m_ref, b1_ref, w2_ref, b2_ref,
                  wq_ref, bq_ref, o_ref):
    # Fused concat: cat([s, m]) @ w1 == s @ w1_s + m @ w1_m.
    h1 = (jnp.dot(s_ref[...], w1s_ref[...], preferred_element_type=jnp.float32)
          + jnp.dot(m_ref[...], w1m_ref[...], preferred_element_type=jnp.float32)
          + b1_ref[...])
    h1 = jnp.maximum(h1, 0.0)
    h2 = jnp.dot(h1, w2_ref[...], preferred_element_type=jnp.float32) + b2_ref[...]
    h2 = jnp.maximum(h2, 0.0)
    # Fused per-agent heads: one (H2, num_agents*action_dim) matmul.
    q = jnp.dot(h2, wq_ref[...], preferred_element_type=jnp.float32) + bq_ref[...]
    o_ref[...] = q.astype(o_ref.dtype)


@functools.partial(jax.jit, static_argnums=(3, 4, 5))
def mf_dqn_forward(states, mean_field, params, num_agents, action_dim,
                   block_b=8192):
    """states: (B, num_link*num_link_fea), mean_field: (B, action_dim).
    Returns q_values: (B, num_agents, action_dim)."""
    w1s, w1m, b1, w2, b2, wq, bq = params
    B, state_dim = states.shape
    H = w1s.shape[1]
    H2 = w2.shape[1]
    out_dim = num_agents * action_dim          # real output width (no padding)

    TB = _choose_batch_tile(B, block_b)
    grid = (_cdiv(B, TB),)                     # ragged last block is fine (no
                                               # cross-row reduction; writes clipped)

    weight = lambda shape: pl.BlockSpec(shape, lambda i: (0, 0))  # stationary

    weight_bytes = 4 * (state_dim * H + action_dim * H + H
                        + H * H2 + H2 + H2 * out_dim + out_dim)
    cost = pl.CostEstimate(
        flops=2 * B * (state_dim * H + action_dim * H + H * H2 + H2 * out_dim),
        transcendentals=0,
        bytes_accessed=4 * B * (state_dim + action_dim + out_dim) + weight_bytes,
    )

    q_flat = pl.pallas_call(
        mf_dqn_kernel,
        out_shape=jax.ShapeDtypeStruct((B, out_dim), jnp.float32),
        grid=grid,
        in_specs=[
            pl.BlockSpec((TB, state_dim), lambda i: (i, 0)),
            pl.BlockSpec((TB, action_dim), lambda i: (i, 0)),
            weight(w1s.shape), weight(w1m.shape), weight(b1.shape),
            weight(w2.shape), weight(b2.shape),
            weight(wq.shape), weight(bq.shape),
        ],
        out_specs=pl.BlockSpec((TB, out_dim), lambda i: (i, 0)),
        compiler_params=pltpu.CompilerParams(
            dimension_semantics=("parallel",)),
        cost_estimate=cost,
    )(states, mean_field, w1s, w1m, b1, w2, b2, wq, bq)

    return q_flat.reshape(B, num_agents, action_dim)


def init_params(key, state_dim, action_dim, hidden, hidden2, num_agents):
    """Deterministic synthetic init mirroring nn.Linear fan-in uniform bounds.
    Weights are already in kernel layout: w1 split by input (states /
    mean_field) and the per-agent q-heads fused into one (H2, A*act) matrix."""
    ks = jax.random.split(key, 6)
    in_dim = state_dim + action_dim
    out_dim = num_agents * action_dim

    def lin(kw, kb, fan_in, fan_out):
        bound = 1.0 / jnp.sqrt(float(fan_in))
        w = jax.random.uniform(kw, (fan_in, fan_out), jnp.float32, -bound, bound)
        b = jax.random.uniform(kb, (1, fan_out), jnp.float32, -bound, bound)
        return w, b

    w1, b1 = lin(ks[0], ks[1], in_dim, hidden)
    w1s, w1m = w1[:state_dim], w1[state_dim:]          # split for fused concat
    w2, b2 = lin(ks[2], ks[3], hidden, hidden2)
    wq, bq = lin(ks[4], ks[5], hidden2, out_dim)       # fused per-agent heads
    return (w1s, w1m, b1, w2, b2, wq, bq), (w1, b1, w2, b2, wq, bq)


if __name__ == "__main__":
    # Small synthetic config consistent with the module's __init__.
    num_agents = 4
    num_link = 4
    num_link_fea = 2
    action_dim = 4
    hidden_dim = 32
    hidden_dim2 = 32
    batch = 8

    state_dim = num_link * num_link_fea            # 8

    key = jax.random.PRNGKey(0)
    k_s, k_m, k_p = jax.random.split(key, 3)
    states = jax.random.normal(k_s, (batch, state_dim), jnp.float32)
    mean_field = jax.random.uniform(k_m, (batch, action_dim), jnp.float32)
    mean_field = mean_field / jnp.sum(mean_field, axis=-1, keepdims=True)

    params, ref_params = init_params(k_p, state_dim, action_dim,
                                     hidden_dim, hidden_dim2, num_agents)

    q_values = mf_dqn_forward(states, mean_field, params, num_agents, action_dim)
    q_values = jax.block_until_ready(q_values)
    assert q_values.shape == (batch, num_agents, action_dim)

    # Sanity check against plain-JAX reference (unsplit weights).
    w1, b1, w2, b2, wq, bq = ref_params
    x = jnp.concatenate([states, mean_field], axis=-1)
    h = jnp.maximum(x @ w1 + b1, 0.0)
    h = jnp.maximum(h @ w2 + b2, 0.0)
    ref = (h @ wq + bq).reshape(batch, num_agents, action_dim)
    assert jnp.allclose(q_values, ref, atol=1e-5, rtol=1e-5)

    # Exercise a ragged / multi-step grid too (B not a multiple of the tile).
    batch2 = 20
    k2s, k2m = jax.random.split(jax.random.PRNGKey(1), 2)
    states2 = jax.random.normal(k2s, (batch2, state_dim), jnp.float32)
    mf2 = jax.nn.softmax(jax.random.normal(k2m, (batch2, action_dim)), axis=-1)
    q2 = jax.block_until_ready(
        mf_dqn_forward(states2, mf2, params, num_agents, action_dim, 8))
    x2 = jnp.concatenate([states2, mf2], axis=-1)
    h2r = jnp.maximum(x2 @ w1 + b1, 0.0)
    h2r = jnp.maximum(h2r @ w2 + b2, 0.0)
    ref2 = (h2r @ wq + bq).reshape(batch2, num_agents, action_dim)
    assert jnp.allclose(q2, ref2, atol=1e-5, rtol=1e-5)

    print("KERNEL_OK")
</pallas_src>

<mosaic_0001>
module attributes {stable_mosaic.version = 11 : i64} {
  func.func @mf_dqn_kernel(%arg0: i32, %arg1: memref<8x8xf32, #tpu.memory_space<vmem>>, %arg2: memref<8x4xf32, #tpu.memory_space<vmem>>, %arg3: memref<8x32xf32, #tpu.memory_space<vmem>>, %arg4: memref<4x32xf32, #tpu.memory_space<vmem>>, %arg5: memref<1x32xf32, #tpu.memory_space<vmem>>, %arg6: memref<32x32xf32, #tpu.memory_space<vmem>>, %arg7: memref<1x32xf32, #tpu.memory_space<vmem>>, %arg8: memref<32x16xf32, #tpu.memory_space<vmem>>, %arg9: memref<1x16xf32, #tpu.memory_space<vmem>>, %arg10: memref<8x16xf32, #tpu.memory_space<vmem>>) attributes {dimension_semantics = [#tpu.dimension_semantics<parallel>], iteration_bounds = array<i64: 1>, scalar_prefetch = 0 : i64, scratch_operands = 0 : i64, tpu.core_type = #tpu.core_type<tc>, window_params = [{transform_indices = @transform_0, window_bounds = array<i64: 8, 8>}, {transform_indices = @transform_1, window_bounds = array<i64: 8, 4>}, {pipeline_mode = #tpu.pipeline_mode<synchronous>, transform_indices = @transform_2, window_bounds = array<i64: 8, 32>}, {pipeline_mode = #tpu.pipeline_mode<synchronous>, transform_indices = @transform_3, window_bounds = array<i64: 4, 32>}, {pipeline_mode = #tpu.pipeline_mode<synchronous>, transform_indices = @transform_4, window_bounds = array<i64: 1, 32>}, {pipeline_mode = #tpu.pipeline_mode<synchronous>, transform_indices = @transform_5, window_bounds = array<i64: 32, 32>}, {pipeline_mode = #tpu.pipeline_mode<synchronous>, transform_indices = @transform_6, window_bounds = array<i64: 1, 32>}, {pipeline_mode = #tpu.pipeline_mode<synchronous>, transform_indices = @transform_7, window_bounds = array<i64: 32, 16>}, {pipeline_mode = #tpu.pipeline_mode<synchronous>, transform_indices = @transform_8, window_bounds = array<i64: 1, 16>}, {transform_indices = @transform_9, window_bounds = array<i64: 8, 16>}]} {
    %c0 = arith.constant 0 : index
    %c0_0 = arith.constant 0 : index
    %0 = vector.load %arg1[%c0, %c0_0] : memref<8x8xf32, #tpu.memory_space<vmem>>, vector<8x8xf32>
    %c0_1 = arith.constant 0 : index
    %c0_2 = arith.constant 0 : index
    %1 = vector.load %arg3[%c0_1, %c0_2] : memref<8x32xf32, #tpu.memory_space<vmem>>, vector<8x32xf32>
    %cst = arith.constant dense<0.000000e+00> : vector<8x32xf32>
    %2 = tpu.matmul %0, %1, %cst {dimension_numbers = #tpu.dot_dimension_numbers<[1], [0], [0], [1], [0, 0, 1, 1], [], []>} : vector<8x8xf32>, vector<8x32xf32>, vector<8x32xf32> -> vector<8x32xf32>
    %c0_3 = arith.constant 0 : index
    %c0_4 = arith.constant 0 : index
    %3 = vector.load %arg2[%c0_3, %c0_4] : memref<8x4xf32, #tpu.memory_space<vmem>>, vector<8x4xf32>
    %c0_5 = arith.constant 0 : index
    %c0_6 = arith.constant 0 : index
    %4 = vector.load %arg4[%c0_5, %c0_6] : memref<4x32xf32, #tpu.memory_space<vmem>>, vector<4x32xf32>
    %cst_7 = arith.constant dense<0.000000e+00> : vector<8x32xf32>
    %5 = tpu.matmul %3, %4, %cst_7 {dimension_numbers = #tpu.dot_dimension_numbers<[1], [0], [0], [1], [0, 0, 1, 1], [], []>} : vector<8x4xf32>, vector<4x32xf32>, vector<8x32xf32> -> vector<8x32xf32>
    %6 = arith.addf %2, %5 : vector<8x32xf32>
    %c0_8 = arith.constant 0 : index
    %c0_9 = arith.constant 0 : index
    %7 = vector.load %arg5[%c0_8, %c0_9] : memref<1x32xf32, #tpu.memory_space<vmem>>, vector<1x32xf32>
    %8 = vector.broadcast %7 : vector<1x32xf32> to vector<8x32xf32>
    %9 = arith.addf %6, %8 : vector<8x32xf32>
    %cst_10 = arith.constant 0.000000e+00 : f32
    %10 = vector.broadcast %cst_10 : f32 to vector<8x32xf32>
    %11 = arith.maximumf %9, %10 : vector<8x32xf32>
    %c0_11 = arith.constant 0 : index
    %c0_12 = arith.constant 0 : index
    %12 = vector.load %arg6[%c0_11, %c0_12] : memref<32x32xf32, #tpu.memory_space<vmem>>, vector<32x32xf32>
    %cst_13 = arith.constant dense<0.000000e+00> : vector<8x32xf32>
    %13 = tpu.matmul %11, %12, %cst_13 {dimension_numbers = #tpu.dot_dimension_numbers<[1], [0], [0], [1], [0, 0, 1, 1], [], []>} : vector<8x32xf32>, vector<32x32xf32>, vector<8x32xf32> -> vector<8x32xf32>
    %c0_14 = arith.constant 0 : index
    %c0_15 = arith.constant 0 : index
    %14 = vector.load %arg7[%c0_14, %c0_15] : memref<1x32xf32, #tpu.memory_space<vmem>>, vector<1x32xf32>
    %15 = vector.broadcast %14 : vector<1x32xf32> to vector<8x32xf32>
    %16 = arith.addf %13, %15 : vector<8x32xf32>
    %cst_16 = arith.constant 0.000000e+00 : f32
    %17 = vector.broadcast %cst_16 : f32 to vector<8x32xf32>
    %18 = arith.maximumf %16, %17 : vector<8x32xf32>
    %c0_17 = arith.constant 0 : index
    %c0_18 = arith.constant 0 : index
    %19 = vector.load %arg8[%c0_17, %c0_18] : memref<32x16xf32, #tpu.memory_space<vmem>>, vector<32x16xf32>
    %cst_19 = arith.constant dense<0.000000e+00> : vector<8x16xf32>
    %20 = tpu.matmul %18, %19, %cst_19 {dimension_numbers = #tpu.dot_dimension_numbers<[1], [0], [0], [1], [0, 0, 1, 1], [], []>} : vector<8x32xf32>, vector<32x16xf32>, vector<8x16xf32> -> vector<8x16xf32>
    %c0_20 = arith.constant 0 : index
    %c0_21 = arith.constant 0 : index
    %21 = vector.load %arg9[%c0_20, %c0_21] : memref<1x16xf32, #tpu.memory_space<vmem>>, vector<1x16xf32>
    %22 = vector.broadcast %21 : vector<1x16xf32> to vector<8x16xf32>
    %23 = arith.addf %20, %22 : vector<8x16xf32>
    %c0_22 = arith.constant 0 : index
    %c0_23 = arith.constant 0 : index
    %24 = vector.load %arg10[%c0_22, %c0_23] : memref<8x16xf32, #tpu.memory_space<vmem>>, vector<8x16xf32>
    tpu.vector_store %arg10[%c0_22, %c0_23], %23 {strides = array<i32>} : memref<8x16xf32, #tpu.memory_space<vmem>>, vector<8x16xf32>,
    return
  }
  func.func @transform_0(%arg0: i32) -> (i32, i32) {
    %c0_i32 = arith.constant 0 : i32
    %c0_i32_0 = arith.constant 0 : i32
    return %arg0, %c0_i32 : i32, i32
  }
  func.func @transform_1(%arg0: i32) -> (i32, i32) {
    %c0_i32 = arith.constant 0 : i32
    %c0_i32_0 = arith.constant 0 : i32
    return %arg0, %c0_i32 : i32, i32
  }
  func.func @transform_2(%arg0: i32) -> (i32, i32) {
    %c0_i32 = arith.constant 0 : i32
    %c0_i32_0 = arith.constant 0 : i32
    %c0_i32_1 = arith.constant 0 : i32
    return %c0_i32, %c0_i32_0 : i32, i32
  }
  func.func @transform_3(%arg0: i32) -> (i32, i32) {
    %c0_i32 = arith.constant 0 : i32
    %c0_i32_0 = arith.constant 0 : i32
    %c0_i32_1 = arith.constant 0 : i32
    return %c0_i32, %c0_i32_0 : i32, i32
  }
  func.func @transform_4(%arg0: i32) -> (i32, i32) {
    %c0_i32 = arith.constant 0 : i32
    %c0_i32_0 = arith.constant 0 : i32
    %c0_i32_1 = arith.constant 0 : i32
    return %c0_i32, %c0_i32_0 : i32, i32
  }
  func.func @transform_5(%arg0: i32) -> (i32, i32) {
    %c0_i32 = arith.constant 0 : i32
    %c0_i32_0 = arith.constant 0 : i32
    %c0_i32_1 = arith.constant 0 : i32
    return %c0_i32, %c0_i32_0 : i32, i32
  }
  func.func @transform_6(%arg0: i32) -> (i32, i32) {
    %c0_i32 = arith.constant 0 : i32
    %c0_i32_0 = arith.constant 0 : i32
    %c0_i32_1 = arith.constant 0 : i32
    return %c0_i32, %c0_i32_0 : i32, i32
  }
  func.func @transform_7(%arg0: i32) -> (i32, i32) {
    %c0_i32 = arith.constant 0 : i32
    %c0_i32_0 = arith.constant 0 : i32
    %c0_i32_1 = arith.constant 0 : i32
    return %c0_i32, %c0_i32_0 : i32, i32
  }
  func.func @transform_8(%arg0: i32) -> (i32, i32) {
    %c0_i32 = arith.constant 0 : i32
    %c0_i32_0 = arith.constant 0 : i32
    %c0_i32_1 = arith.constant 0 : i32
    return %c0_i32, %c0_i32_0 : i32, i32
  }
  func.func @transform_9(%arg0: i32) -> (i32, i32) {
    %c0_i32 = arith.constant 0 : i32
    %c0_i32_0 = arith.constant 0 : i32
    return %arg0, %c0_i32 : i32, i32
  }
}

</mosaic_0001>

<bundles_post_ra>
// kernel: mf_dqn_forward.1
= control target key start
LH: loop header
LB: loop body
LE: loop exit
PB: predicated region body
PF: predicated region fallthrough
CT: control target
= control target key end

     0   :  { %14 = vsyncpa [#allocation3], 0  ;;  %s214_s12 = smov [#allocation2]   ;;  %s313_s0 = inlined_call_operand.vmem [shape: f32[8,8], index: 0, kind: input, shape index: {}]   ;;  %s314_s1 = inlined_call_operand.vmem [shape: f32[8,4], index: 1, kind: input, shape index: {}]   ;;  %s315_s2 = inlined_call_operand.vmem [shape: f32[8,32], index: 2, kind: input, shape index: {}]   ;;  %s316_s3 = inlined_call_operand.hbm [shape: f32[4,32], index: 3, kind: input, shape index: {}]   ;;  %s317_s4 = inlined_call_operand.vmem [shape: f32[1,32], index: 4, kind: input, shape index: {}]   ;;  %s318_s5 = inlined_call_operand.vmem [shape: f32[32,32], index: 5, kind: input, shape index: {}]   ;;  %s319_s6 = inlined_call_operand.vmem [shape: f32[1,32], index: 6, kind: input, shape index: {}]   ;;  %s320_s7 = inlined_call_operand.vmem [shape: f32[32,16], index: 7, kind: input, shape index: {}]   ;;  %s321_s8 = inlined_call_operand.vmem [shape: f32[1,16], index: 8, kind: input, shape index: {}]   ;;  %s322_s9 = inlined_call_operand.vmem [shape: f32[8,16], index: 9, kind: output, shape index: {}]  }
   0x1   :  { %s26_s11 = sshll.u32 %s316_s3, 4  ;;  %s28_s13 = sshll.u32 %s214_s12, 4  ;;  %s27_s11 = int_to_ptr.hbm [resolvable:$true] %s26_s11  ;;  %s29_s13 = int_to_ptr.vmem [resolvable:$true] %s28_s13 }
   0x2   :  { %31 = dma.hbm_to_vmem [thread:$0]  %s27_s11, 64, %s29_s13, [#allocation3]  }
   0x3   :  { %212 = dma.done.wait [#allocation3], 64  }
   0x4   :  { %213 = vsyncadd [#allocation3], 4294967232  ;;  %vm54_vm0 = vcmask 1043456   ;;  %vm50_vm1 = vcmask 31744   ;;  %vm78_vm2 = vcmask 64512   ;;  %v47_v1 = vld [vmem:[%s315_s2] sm:$0xff] }
   0x5   :  { %v49_v0 = vld [vmem:[#allocation2] sm:$0xf]  ;;  %97 = vmatpush.msra.mxu1 %v47_v1  ;;  %v111_v4 = vld [vmem:[%s318_s5 + $0x18] sm:$0xff]  ;;  %v110_v5 = vld [vmem:[%s318_s5 + $0x10] sm:$0xff]  ;;  %vm116_vm3 = vcmask 261120   ;;  %vm172_vm4 = vcmask 130048  }
   0x6   :  { %v48_v2 = vld [vmem:[%s314_s1] sm:$0xff]  ;;  %179 = vmatpush.msk.msra.mxu0 %vm54_vm0, %v49_v0  ;;  %132 = vmatpush.msra.mxu2 %v111_v4  ;;  %v109_v6 = vld [vmem:[%s318_s5 + $0x8] sm:$0xff]  ;;  %v144_v8 = vld [vmem:[%s320_s7 + $0x18] sm:$0xff] }
   0x7   :  { %v46_v3 = vld [vmem:[%s313_s0] sm:$0xff]  ;;  %180 = vmatmul.msk.f32.vlgmr.msra.gmra.mxu0 %vm50_vm1, %v48_v2  ;;  %164 = vmatpush.msra.mxu3 %v144_v8  ;;  %v143_v15 = vld [vmem:[%s320_s7 + $0x10] sm:$0xff]  ;;  %v142_v16 = vld [vmem:[%s320_s7 + $0x8] sm:$0xff] }
   0x8   :  { %181 = vmatmul.msk.f32.vlgmr.msra.gmra.mxu1 %vm78_vm2, %v46_v3  ;;  %133 = vmatpush.msra.mxu2 %v110_v5  ;;  %v108_v7 = vld [vmem:[%s318_s5] sm:$0xff] }
   0x9   :  { %v185_v9 = vld [vmem:[%s317_s4] ss:$0 sm:$0xff]  ;;  %165 = vmatpush.msra.mxu3 %v143_v15 }
   0xa   :  { %134 = vmatpush.msra.mxu2 %v109_v6  ;;  %v141_v17 = vld [vmem:[%s320_s7] sm:$0xff] }
   0xb   :  { %166 = vmatpush.msra.mxu3 %v142_v16  ;;  %v186_v18 = vld [vmem:[%s319_s6] ss:$0 sm:$0xff] }
   0xc   :  { %135 = vmatpush.msra.mxu2 %v108_v7  ;;  %v187_v22 = vld [vmem:[%s321_s8] ss:$0 sm:$0xff] }
   0xd   :  { %167 = vmatpush.msra.mxu3 %v141_v17 }
  0x84   :  { %v75_v10 = vpop.f32.mrf.mxu0 }
  0x85   :  { %v99_v11 = vpop.f32.mrf.mxu1 }
  0x86   :  { %v100_v12 = vadd.f32 %v99_v11, %v75_v10 }
  0x88   :  { %v106_v13 = vadd.f32 %v185_v9, %v100_v12 }
  0x8a   :  { %v107_v14 = vmax.f32 %v106_v13, 0.0 }
  0x8c   :  { %182 = vmatmul.msk.f32.vlgmr.msra.gmra.mxu2 %vm116_vm3, %v107_v14 }
 0x10f   :  { %v137_v19 = vpop.f32.mrf.mxu2 }
 0x110   :  { %v138_v20 = vadd.f32 %v186_v18, %v137_v19 }
 0x112   :  { %v140_v21 = vmax.f32 %v138_v20, 0.0 }
 0x114   :  { %183 = vmatmul.msk.f32.vlgmr.msra.gmra.mxu3 %vm116_vm3, %v140_v21 }
 0x197   :  { %v169_v23 = vpop.f32.mrf.mxu3 }
 0x198   :  { %v170_v24 = vadd.f32 %v187_v22, %v169_v23 }
 0x19a   :  { %173 = vst.msk [vmem:[%s322_s9] sm:$0xff] %vm172_vm4, %v170_v24 }
 0x19b   :  { %178 = vsyncpa [#allocation3], 1 }

</bundles_post_ra>
